<compile_context>
chip_gen: v6e
topology: v6e:2x2x1
jax: 0.10.0
libtpu: 0.0.40
codegen_flags: <defaults>
</compile_context>

<pallas_src>
import functools
import math

import jax
import jax.numpy as jnp
from jax import lax
from jax.experimental import pallas as pl
from jax.experimental.pallas import tpu as pltpu

IN, H1, H2, OUT = 5, 128, 64, 1


def _round_up(n, m):
    return ((n + m - 1) // m) * m


def qnet_kernel(x_ref, w1_ref, b1_ref, w2_ref, b2_ref, w3_ref, b3_ref, o_ref):
    # x_ref: [tb, 5] f32 (native layout, streamed)
    # w*_ref: [out, in] bf16; b1/b2: [out, 1] (bf16 on v6e/v7x, f32 on older)
    # b3_ref: (1, 1) f32 scalar in SMEM; o_ref: [1, tb] f32 (lane-dense)
    x = x_ref[...].astype(jnp.bfloat16)                                   # [tb, 5]
    # h1^T = W1 @ x^T  (rhs-transposed matmul, contraction over IN=5)
    h1 = lax.dot_general(w1_ref[...], x, (((1,), (1,)), ((), ())),
                         preferred_element_type=jnp.float32)              # [128, tb]
    h1 = jnp.maximum(h1.astype(b1_ref.dtype) + b1_ref[...], 0).astype(jnp.bfloat16)
    h2 = jnp.dot(w2_ref[...], h1, preferred_element_type=jnp.float32)    # [64, tb]
    h2 = jnp.maximum(h2.astype(b2_ref.dtype) + b2_ref[...], 0).astype(jnp.bfloat16)
    y = jnp.dot(w3_ref[...], h2, preferred_element_type=jnp.float32)     # [1, tb]
    o_ref[...] = (y + b3_ref[0, 0]).astype(o_ref.dtype)


def _epilogue_dtype_for_device():
    """bf16 bias/ReLU epilogue on chips with bf16 VPU lanes (v6e/v7x); f32 otherwise."""
    try:
        kind = jax.devices()[0].device_kind.lower()
    except Exception:
        return jnp.bfloat16
    if any(v in kind for v in ("v2", "v3", "v4", "v5")):
        return jnp.float32
    return jnp.bfloat16


@functools.partial(jax.jit, static_argnames=("tb", "epi"))
def _forward_impl(x, params, *, tb, epi):
    w1, b1, w2, b2, w3, b3 = params
    B = x.shape[0]
    epi_dtype = jnp.bfloat16 if epi == "bf16" else jnp.float32
    grid = (pl.cdiv(B, tb),)

    w1b = w1.astype(jnp.bfloat16)            # [128, 5]
    w2b = w2.astype(jnp.bfloat16)            # [64, 128]
    w3b = w3.astype(jnp.bfloat16)            # [1, 64]
    b1e = b1.astype(epi_dtype)               # [128, 1]
    b2e = b2.astype(epi_dtype)               # [64, 1]

    const = lambda a: pl.BlockSpec(a.shape, lambda i: (0, 0))  # VMEM-resident

    flops = 2 * B * (IN * H1 + H1 * H2 + H2 * OUT)
    bytes_accessed = (x.size * x.dtype.itemsize + B * OUT * 4
                      + 2 * (w1b.size + w2b.size + w3b.size + b1e.size + b2e.size) + 4)
    cost = pl.CostEstimate(flops=int(flops), transcendentals=0,
                           bytes_accessed=int(bytes_accessed))

    # VMEM: double-buffered lane-padded x tile + f32/bf16 hidden temps (+ headroom).
    per_col = 2 * 128 * 4 + H1 * (4 + 2) + H2 * (4 + 2) + 64
    vmem_limit = int(min(max(tb * per_col + (4 << 20), 32 << 20), 56 << 20))

    out = pl.pallas_call(
        qnet_kernel,
        out_shape=jax.ShapeDtypeStruct((OUT, B), jnp.float32),
        grid=grid,
        in_specs=[
            pl.BlockSpec((tb, IN), lambda i: (i, 0)),            # x rows streamed
            const(w1b), const(b1e),
            const(w2b), const(b2e),
            const(w3b),
            pl.BlockSpec(memory_space=pltpu.MemorySpace.SMEM),   # b3 scalar in SMEM
        ],
        out_specs=pl.BlockSpec((OUT, tb), lambda i: (0, i)),     # lane-dense output
        compiler_params=pltpu.CompilerParams(
            dimension_semantics=("parallel",),
            vmem_limit_bytes=vmem_limit,
        ),
        cost_estimate=cost,
    )(x, w1b, b1e, w2b, b2e, w3b, b3)

    return out.reshape(B, OUT)                                   # [B, 1] f32


def qnetwork_forward(x, params, *, tb=8192, epilogue_dtype=None):
    """x: [B, 5] f32 -> [B, 1] f32 (QNetwork forward pass)."""
    B = x.shape[0]
    if epilogue_dtype is None:
        epilogue_dtype = _epilogue_dtype_for_device()
    epi = "bf16" if jnp.dtype(epilogue_dtype) == jnp.dtype(jnp.bfloat16) else "f32"

    # Batch tile: multiple of 256, capped at 16K; don't over-tile tiny batches and
    # keep >=2 grid steps for big batches (megacore on multi-TensorCore chips).
    tb = _round_up(max(256, min(int(tb), 16384)), 256)
    tb = min(tb, _round_up(B, 256))
    if B > 512:
        tb = min(tb, _round_up(-(-B // 2), 256))
    tb = max(256, tb)

    return _forward_impl(x, params, tb=tb, epi=epi)


def init_params(key):
    """PyTorch nn.Linear-style init: U(-1/sqrt(fan_in), 1/sqrt(fan_in)).
    Weights in [out, in] layout; biases as [out, 1] columns (b3 is (1, 1))."""
    dims = [(IN, H1), (H1, H2), (H2, OUT)]
    params = []
    for fan_in, fan_out in dims:
        key, kw, kb = jax.random.split(key, 3)
        bound = 1.0 / math.sqrt(fan_in)
        w = jax.random.uniform(kw, (fan_out, fan_in), jnp.float32, -bound, bound)
        b = jax.random.uniform(kb, (fan_out, 1), jnp.float32, -bound, bound)
        params += [w, b]
    return tuple(params)


def reference_forward(x, params, epi_dtype=jnp.bfloat16):
    """Pure-JAX reference mirroring the kernel's precision pipeline
    (bf16 matmul operands, f32 accumulation, epilogue in epi_dtype)."""
    w1, b1, w2, b2, w3, b3 = params
    bf = lambda a: a.astype(jnp.bfloat16)
    h = jnp.dot(bf(x), bf(w1).T, preferred_element_type=jnp.float32)
    h = jnp.maximum(h.astype(epi_dtype) + b1.reshape(1, -1).astype(epi_dtype), 0)
    h = h.astype(jnp.bfloat16)
    h = jnp.dot(h, bf(w2).T, preferred_element_type=jnp.float32)
    h = jnp.maximum(h.astype(epi_dtype) + b2.reshape(1, -1).astype(epi_dtype), 0)
    h = h.astype(jnp.bfloat16)
    return jnp.dot(h, bf(w3).T, preferred_element_type=jnp.float32) + b3.reshape(1, -1)


if __name__ == "__main__":
    key = jax.random.PRNGKey(0)
    key, kx = jax.random.split(key)
    B = 8
    x = jax.random.normal(kx, (B, IN), jnp.float32)
    params = init_params(key)

    epi_dtype = _epilogue_dtype_for_device()
    out = qnetwork_forward(x, params, epilogue_dtype=epi_dtype)
    out = jax.block_until_ready(out)

    ref = reference_forward(x, params, epi_dtype)
    assert out.shape == (B, OUT), out.shape
    assert jnp.allclose(out, ref, atol=1e-2, rtol=1e-2), (out, ref)
    print("KERNEL_OK")
</pallas_src>

<mosaic_0001>
module attributes {stable_mosaic.version = 11 : i64} {
  func.func @qnet_kernel(%arg0: i32, %arg1: memref<256x5xf32, #tpu.memory_space<vmem>>, %arg2: memref<128x5xbf16, #tpu.memory_space<vmem>>, %arg3: memref<128x1xbf16, #tpu.memory_space<vmem>>, %arg4: memref<64x128xbf16, #tpu.memory_space<vmem>>, %arg5: memref<64x1xbf16, #tpu.memory_space<vmem>>, %arg6: memref<1x64xbf16, #tpu.memory_space<vmem>>, %arg7: memref<1x1xf32, #tpu.memory_space<smem>>, %arg8: memref<1x256xf32, #tpu.memory_space<vmem>>) attributes {dimension_semantics = [#tpu.dimension_semantics<parallel>], iteration_bounds = array<i64: 1>, scalar_prefetch = 0 : i64, scratch_operands = 0 : i64, tpu.core_type = #tpu.core_type<tc>, window_params = [{transform_indices = @transform_0, window_bounds = array<i64: 256, 5>}, {pipeline_mode = #tpu.pipeline_mode<synchronous>, transform_indices = @transform_1, window_bounds = array<i64: 128, 5>}, {pipeline_mode = #tpu.pipeline_mode<synchronous>, transform_indices = @transform_2, window_bounds = array<i64: 128, 1>}, {pipeline_mode = #tpu.pipeline_mode<synchronous>, transform_indices = @transform_3, window_bounds = array<i64: 64, 128>}, {pipeline_mode = #tpu.pipeline_mode<synchronous>, transform_indices = @transform_4, window_bounds = array<i64: 64, 1>}, {pipeline_mode = #tpu.pipeline_mode<synchronous>, transform_indices = @transform_5, window_bounds = array<i64: 1, 64>}, {transform_indices = @transform_6, window_bounds = array<i64: 1, 1>}, {transform_indices = @transform_7, window_bounds = array<i64: 1, 256>}]} {
    %c0 = arith.constant 0 : index
    %c0_0 = arith.constant 0 : index
    %0 = vector.load %arg1[%c0, %c0_0] : memref<256x5xf32, #tpu.memory_space<vmem>>, vector<256x5xf32>
    %1 = arith.truncf %0 : vector<256x5xf32> to vector<256x5xbf16>
    %c0_1 = arith.constant 0 : index
    %c0_2 = arith.constant 0 : index
    %2 = vector.load %arg2[%c0_1, %c0_2] : memref<128x5xbf16, #tpu.memory_space<vmem>>, vector<128x5xbf16>
    %cst = arith.constant dense<0.000000e+00> : vector<128x256xf32>
    %3 = tpu.matmul %2, %1, %cst {dimension_numbers = #tpu.dot_dimension_numbers<[1], [1], [0], [0], [0, 0, 1, 0], [], []>} : vector<128x5xbf16>, vector<256x5xbf16>, vector<128x256xf32> -> vector<128x256xf32>
    %4 = arith.truncf %3 : vector<128x256xf32> to vector<128x256xbf16>
    %c0_3 = arith.constant 0 : index
    %c0_4 = arith.constant 0 : index
    %5 = vector.load %arg3[%c0_3, %c0_4] : memref<128x1xbf16, #tpu.memory_space<vmem>>, vector<128x1xbf16>
    %6 = vector.broadcast %5 : vector<128x1xbf16> to vector<128x256xbf16>
    %7 = arith.addf %4, %6 : vector<128x256xbf16>
    %cst_5 = arith.constant 0.000000e+00 : bf16
    %8 = vector.broadcast %cst_5 : bf16 to vector<128x256xbf16>
    %9 = arith.maximumf %7, %8 : vector<128x256xbf16>
    %c0_6 = arith.constant 0 : index
    %c0_7 = arith.constant 0 : index
    %10 = vector.load %arg4[%c0_6, %c0_7] : memref<64x128xbf16, #tpu.memory_space<vmem>>, vector<64x128xbf16>
    %cst_8 = arith.constant dense<0.000000e+00> : vector<64x256xf32>
    %11 = tpu.matmul %10, %9, %cst_8 {dimension_numbers = #tpu.dot_dimension_numbers<[1], [0], [0], [1], [0, 0, 1, 1], [], []>} : vector<64x128xbf16>, vector<128x256xbf16>, vector<64x256xf32> -> vector<64x256xf32>
    %12 = arith.truncf %11 : vector<64x256xf32> to vector<64x256xbf16>
    %c0_9 = arith.constant 0 : index
    %c0_10 = arith.constant 0 : index
    %13 = vector.load %arg5[%c0_9, %c0_10] : memref<64x1xbf16, #tpu.memory_space<vmem>>, vector<64x1xbf16>
    %14 = vector.broadcast %13 : vector<64x1xbf16> to vector<64x256xbf16>
    %15 = arith.addf %12, %14 : vector<64x256xbf16>
    %cst_11 = arith.constant 0.000000e+00 : bf16
    %16 = vector.broadcast %cst_11 : bf16 to vector<64x256xbf16>
    %17 = arith.maximumf %15, %16 : vector<64x256xbf16>
    %c0_12 = arith.constant 0 : index
    %c0_13 = arith.constant 0 : index
    %18 = vector.load %arg6[%c0_12, %c0_13] : memref<1x64xbf16, #tpu.memory_space<vmem>>, vector<1x64xbf16>
    %cst_14 = arith.constant dense<0.000000e+00> : vector<1x256xf32>
    %19 = tpu.matmul %18, %17, %cst_14 {dimension_numbers = #tpu.dot_dimension_numbers<[1], [0], [0], [1], [0, 0, 1, 1], [], []>} : vector<1x64xbf16>, vector<64x256xbf16>, vector<1x256xf32> -> vector<1x256xf32>
    %c0_15 = arith.constant 0 : index
    %c0_16 = arith.constant 0 : index
    %20 = memref.load %arg7[%c0_15, %c0_16] : memref<1x1xf32, #tpu.memory_space<smem>>
    %21 = vector.broadcast %20 : f32 to vector<1x256xf32>
    %22 = arith.addf %19, %21 : vector<1x256xf32>
    %c0_17 = arith.constant 0 : index
    %c0_18 = arith.constant 0 : index
    %23 = vector.load %arg8[%c0_17, %c0_18] : memref<1x256xf32, #tpu.memory_space<vmem>>, vector<1x256xf32>
    tpu.vector_store %arg8[%c0_17, %c0_18], %22 {strides = array<i32>} : memref<1x256xf32, #tpu.memory_space<vmem>>, vector<1x256xf32>,
    return
  }
  func.func @transform_0(%arg0: i32) -> (i32, i32) {
    %c0_i32 = arith.constant 0 : i32
    %c0_i32_0 = arith.constant 0 : i32
    return %arg0, %c0_i32 : i32, i32
  }
  func.func @transform_1(%arg0: i32) -> (i32, i32) {
    %c0_i32 = arith.constant 0 : i32
    %c0_i32_0 = arith.constant 0 : i32
    %c0_i32_1 = arith.constant 0 : i32
    return %c0_i32, %c0_i32_0 : i32, i32
  }
  func.func @transform_2(%arg0: i32) -> (i32, i32) {
    %c0_i32 = arith.constant 0 : i32
    %c0_i32_0 = arith.constant 0 : i32
    %c0_i32_1 = arith.constant 0 : i32
    return %c0_i32, %c0_i32_0 : i32, i32
  }
  func.func @transform_3(%arg0: i32) -> (i32, i32) {
    %c0_i32 = arith.constant 0 : i32
    %c0_i32_0 = arith.constant 0 : i32
    %c0_i32_1 = arith.constant 0 : i32
    return %c0_i32, %c0_i32_0 : i32, i32
  }
  func.func @transform_4(%arg0: i32) -> (i32, i32) {
    %c0_i32 = arith.constant 0 : i32
    %c0_i32_0 = arith.constant 0 : i32
    %c0_i32_1 = arith.constant 0 : i32
    return %c0_i32, %c0_i32_0 : i32, i32
  }
  func.func @transform_5(%arg0: i32) -> (i32, i32) {
    %c0_i32 = arith.constant 0 : i32
    %c0_i32_0 = arith.constant 0 : i32
    %c0_i32_1 = arith.constant 0 : i32
    return %c0_i32, %c0_i32_0 : i32, i32
  }
  func.func @transform_6(%arg0: i32) -> (i32, i32) {
    %c0_i32 = arith.constant 0 : i32
    %c0_i32_0 = arith.constant 0 : i32
    %c0_i32_1 = arith.constant 0 : i32
    return %c0_i32, %c0_i32_0 : i32, i32
  }
  func.func @transform_7(%arg0: i32) -> (i32, i32) {
    %c0_i32 = arith.constant 0 : i32
    %c0_i32_0 = arith.constant 0 : i32
    return %c0_i32, %arg0 : i32, i32
  }
}

</mosaic_0001>

<bundles_post_ra>
// kernel: _forward_impl.1
= control target key start
LH: loop header
LB: loop body
LE: loop exit
PB: predicated region body
PF: predicated region fallthrough
CT: control target
= control target key end

     0   :  { %13 = vsyncpa [#allocation4], 0  ;;  %vm133_vm0 = vcmask 39936   ;;  %v1078_v6 = vmov 0   ;;  %vm883_vm1 = vcmask 523264   ;;  %s1506_s0 = inlined_call_operand.vmem [shape: f32[8,5], index: 0, kind: input, shape index: {}]   ;;  %s1507_s1 = inlined_call_operand.vmem [shape: bf16[128,5], index: 1, kind: input, shape index: {}]   ;;  %s1508_s2 = inlined_call_operand.vmem [shape: bf16[128,1], index: 2, kind: input, shape index: {}]   ;;  %s1509_s3 = inlined_call_operand.vmem [shape: bf16[64,128], index: 3, kind: input, shape index: {}]   ;;  %s1510_s4 = inlined_call_operand.vmem [shape: bf16[64,1], index: 4, kind: input, shape index: {}]   ;;  %s1511_s5 = inlined_call_operand.vmem [shape: bf16[1,64], index: 5, kind: input, shape index: {}]   ;;  %s1512_s6 = inlined_call_operand.<no memory space> [shape: f32[1,1], index: 6, kind: input, shape index: {}]   ;;  %s1513_s7 = inlined_call_operand.hbm [shape: f32[1,8], index: 7, kind: output, shape index: {}]  }
   0x1   :  { %v59_v0 = vld [vmem:[%s1506_s0 + $0xf0] sm:$0xff]  ;;  %v60_v1 = vld [vmem:[%s1506_s0 + $0xf8] sm:$0xff]  ;;  %v57_v5 = vld [vmem:[%s1506_s0 + $0xe0] sm:$0xff]  ;;  %1043 = vset.pattern.permute.xlu1 %v1078_v6  ;;  %1042 = vset.pattern.permute.xlu0 %v1078_v6 }
   0x2   :  { %v76_v2 = vpack.c.bf16 %v60_v1, %v59_v0  ;;  %v43_v3 = vld [vmem:[%s1506_s0 + $0x70] sm:$0xff]  ;;  %v44_v4 = vld [vmem:[%s1506_s0 + $0x78] sm:$0xff]  ;;  %v58_v8 = vld [vmem:[%s1506_s0 + $0xe8] sm:$0xff]  ;;  %687 = vmatprep.mubr.bf16.mxu1 %v1078_v6 }
   0x3   :  { %v68_v7 = vpack.c.bf16 %v44_v4, %v43_v3  ;;  %v75_v9 = vpack.c.bf16 %v58_v8, %v57_v5  ;;  %v41_v10 = vld [vmem:[%s1506_s0 + $0x60] sm:$0xff]  ;;  %v42_v11 = vld [vmem:[%s1506_s0 + $0x68] sm:$0xff]  ;;  %v55_v14 = vld [vmem:[%s1506_s0 + $0xd0] sm:$0xff] }
   0x4   :  { %1030 = vmatprep.subr.msk.bf16.mxu0 %vm133_vm0, %v76_v2  ;;  %v67_v13 = vpack.c.bf16 %v42_v11, %v41_v10  ;;  %v56_v15 = vld [vmem:[%s1506_s0 + $0xd8] sm:$0xff]  ;;  %v39_v18 = vld [vmem:[%s1506_s0 + $0x50] sm:$0xff]  ;;  %v1168_v20 = vld [vmem:[%s1507_s1] sm:$0xff]  }
   0x5   :  { %v180_v12 = vsel %vm133_vm0, %v68_v7, 0  ;;  %v74_v17 = vpack.c.bf16 %v56_v15, %v55_v14  ;;  %v40_v19 = vld [vmem:[%s1506_s0 + $0x58] sm:$0xff]  ;;  %1014 = vmatprep.mubr.msk.bf16.mxu0 %vm133_vm0, %v1168_v20  ;;  %v53_v22 = vld [vmem:[%s1506_s0 + $0xc0] sm:$0xff]  ;;  %v54_v23 = vld [vmem:[%s1506_s0 + $0xc8] sm:$0xff] }
   0x6   :  { %999 = vmatpush3.bf16.xpose.msra.mxu0 %v180_v12  ;;  %v177_v16 = vsel %vm133_vm0, %v67_v13, 0  ;;  %v66_v21 = vpack.c.bf16 %v40_v19, %v39_v18  ;;  %v349_v24 = vld [vmem:[%s1508_s2 + $0x38] sm:$0xf]  ;;  %v347_v25 = vld [vmem:[%s1508_s2 + $0x30] sm:$0xf]  ;;  %v73_v27 = vpack.c.bf16 %v54_v23, %v53_v22  ;;  %v37_v28 = vld [vmem:[%s1506_s0 + $0x40] sm:$0xff] }
   0x7   :  { %1031 = vmatprep.subr.msk.bf16.mxu0 %vm133_vm0, %v75_v9  ;;  %521 = vperm.xlu0 %1042, %v349_v24   ;;  %v38_v29 = vld [vmem:[%s1506_s0 + $0x48] sm:$0xff]  ;;  %v350_v30 = vld [vmem:[%s1508_s2 + $0x3c] sm:$0xf]  ;;  %v348_v31 = vld [vmem:[%s1508_s2 + $0x34] sm:$0xf] }
   0x8   :  { %v174_v26 = vsel %vm133_vm0, %v66_v21, 0  ;;  %497 = vperm.xlu1 %1043, %v347_v25   ;;  %v65_v32 = vpack.c.bf16 %v38_v29, %v37_v28  ;;  %v51_v33 = vld [vmem:[%s1506_s0 + $0xb0] sm:$0xff]  ;;  %v52_v34 = vld [vmem:[%s1506_s0 + $0xb8] sm:$0xff]  ;;  %v345_v35 = vld [vmem:[%s1508_s2 + $0x28] sm:$0xf] }
   0x9   :  { %v346_v36 = vld [vmem:[%s1508_s2 + $0x2c] sm:$0xf]  ;;  %v35_v37 = vld [vmem:[%s1506_s0 + $0x30] sm:$0xff]  ;;  %v72_v39 = vpack.c.bf16 %v52_v34, %v51_v33  ;;  %v36_v40 = vld [vmem:[%s1506_s0 + $0x38] sm:$0xff] }
   0xa   :  { %v171_v38 = vsel %vm133_vm0, %v65_v32, 0  ;;  %v344_v41 = vld [vmem:[%s1508_s2 + $0x24] sm:$0xf]  ;;  %v343_v42 = vld [vmem:[%s1508_s2 + $0x20] sm:$0xf]  ;;  %v64_v43 = vpack.c.bf16 %v36_v40, %v35_v37  ;;  %v50_v45 = vld [vmem:[%s1506_s0 + $0xa8] sm:$0xff] }
   0xb   :  { %533 = vperm.xlu0 %1042, %v350_v30   ;;  %v49_v44 = vld [vmem:[%s1506_s0 + $0xa0] sm:$0xff]  ;;  %v341_v46 = vld [vmem:[%s1508_s2 + $0x18] sm:$0xf]  ;;  %v342_v47 = vld [vmem:[%s1508_s2 + $0x1c] sm:$0xf] }
   0xc   :  { %509 = vperm.xlu1 %1043, %v348_v31   ;;  %v168_v48 = vsel %vm133_vm0, %v64_v43, 0  ;;  %v71_v49 = vpack.c.bf16 %v50_v45, %v49_v44  ;;  %v33_v50 = vld [vmem:[%s1506_s0 + $0x20] sm:$0xff]  ;;  %v34_v51 = vld [vmem:[%s1506_s0 + $0x28] sm:$0xff]  ;;  %v339_v52 = vld [vmem:[%s1508_s2 + $0x10] sm:$0xf] }
   0xd   :  { %v340_v53 = vld [vmem:[%s1508_s2 + $0x14] sm:$0xf]  ;;  %v63_v54 = vpack.c.bf16 %v34_v51, %v33_v50  ;;  %v48_v56 = vld [vmem:[%s1506_s0 + $0x98] sm:$0xff]  ;;  %v337_v57 = vld [vmem:[%s1508_s2 + $0x8] sm:$0xf] }
   0xe   :  { %1001 = vmatpush3.bf16.xpose.msra.mxu0 %v177_v16  ;;  %v47_v55 = vld [vmem:[%s1506_s0 + $0x90] sm:$0xff]  ;;  %v338_v58 = vld [vmem:[%s1508_s2 + $0xc] sm:$0xf]  ;;  %v32_v62 = vld [vmem:[%s1506_s0 + $0x18] sm:$0xff] }
   0xf   :  { %1032 = vmatprep.subr.msk.bf16.mxu0 %vm133_vm0, %v74_v17  ;;  %473 = vperm.xlu0 %1042, %v345_v35   ;;  %v165_v59 = vsel %vm133_vm0, %v63_v54, 0  ;;  %v70_v60 = vpack.c.bf16 %v48_v56, %v47_v55  ;;  %v31_v61 = vld [vmem:[%s1506_s0 + $0x10] sm:$0xff]  ;;  %v335_v63 = vld [vmem:[%s1508_s2] sm:$0xf]  ;;  %v336_v0 = vld [vmem:[%s1508_s2 + $0x4] sm:$0xf] }
  0x10   :  { %485 = vperm.xlu1 %1043, %v346_v36   ;;  %v62_v1 = vpack.c.bf16 %v32_v62, %v31_v61  ;;  %v45_v2 = vld [vmem:[%s1506_s0 + $0x80] sm:$0xff]  ;;  %v46_v3 = vld [vmem:[%s1506_s0 + $0x88] sm:$0xff]  ;;  %v742_v4 = vld [vmem:[%s1510_s4 + $0x18] sm:$0xf] }
  0x11   :  { %v743_v5 = vld [vmem:[%s1510_s4 + $0x1c] sm:$0xf]  ;;  %v69_v8 = vpack.c.bf16 %v46_v3, %v45_v2  ;;  %v29_v9 = vld [vmem:[%s1506_s0] sm:$0xff]  ;;  %v30_v10 = vld [vmem:[%s1506_s0 + $0x8] sm:$0xff] }
  0x12   :  { %v162_v7 = vsel %vm133_vm0, %v62_v1, 0  ;;  %v740_v11 = vld [vmem:[%s1510_s4 + $0x10] sm:$0xf]  ;;  %v741_v12 = vld [vmem:[%s1510_s4 + $0x14] sm:$0xf]  ;;  %v61_v13 = vpack.c.bf16 %v30_v10, %v29_v9  ;;  %v1045_v19 = vld [vmem:[%s1507_s1 + $0x8] sm:$0xff]  }
  0x13   :  { %449 = vperm.xlu0 %1042, %v343_v42   ;;  %v738_v14 = vld [vmem:[%s1510_s4 + $0x8] sm:$0xf]  ;;  %v739_v15 = vld [vmem:[%s1510_s4 + $0xc] sm:$0xf]  ;;  %v736_v17 = vld [vmem:[%s1510_s4] sm:$0xf] }
  0x14   :  { %461 = vperm.xlu1 %1043, %v344_v41   ;;  %v159_v16 = vsel %vm133_vm0, %v61_v13, 0  ;;  %v737_v18 = vld [vmem:[%s1510_s4 + $0x4] sm:$0xf]  ;;  %v1046_v21 = vld [vmem:[%s1507_s1 + $0x10] sm:$0xff]   ;;  %v1047_v22 = vld [vmem:[%s1507_s1 + $0x18] sm:$0xff]  }
  0x15   :  { %v1049_v23 = vld [vmem:[%s1507_s1 + $0x28] sm:$0xff]   ;;  %v1050_v24 = vld [vmem:[%s1507_s1 + $0x30] sm:$0xff]   ;;  %v1051_v25 = vld [vmem:[%s1507_s1 + $0x38] sm:$0xff]  }
  0x16   :  { %1003 = vmatpush3.bf16.xpose.msra.mxu0 %v174_v26 }
  0x17   :  { %1033 = vmatprep.subr.msk.bf16.mxu0 %vm133_vm0, %v73_v27  ;;  %425 = vperm.xlu0 %1042, %v341_v46  }
  0x18   :  { %437 = vperm.xlu1 %1043, %v342_v47  }
  0x1b   :  { %401 = vperm.xlu0 %1042, %v339_v52  }
  0x1c   :  { %413 = vperm.xlu1 %1043, %v340_v53  }
  0x1e   :  { %1005 = vmatpush3.bf16.xpose.msra.mxu0 %v171_v38 }
  0x1f   :  { %1034 = vmatprep.subr.msk.bf16.mxu0 %vm133_vm0, %v72_v39  ;;  %377 = vperm.xlu0 %1042, %v337_v57  }
  0x20   :  { %389 = vperm.xlu1 %1043, %v338_v58   ;;  %v1079_v58 = vmov 839922192  }
  0x23   :  { %353 = vperm.xlu0 %1042, %v335_v63  }
  0x24   :  { %365 = vperm.xlu1 %1043, %v336_v0  }
  0x26   :  { %1007 = vmatpush3.bf16.xpose.msra.mxu0 %v168_v48 }
  0x27   :  { %1035 = vmatprep.subr.msk.bf16.mxu0 %vm133_vm0, %v71_v49  ;;  %818 = vperm.xlu0 %1042, %v742_v4  }
  0x28   :  { %830 = vperm.xlu1 %1043, %v743_v5  }
  0x2b   :  { %794 = vperm.xlu0 %1042, %v740_v11  }
  0x2c   :  { %806 = vperm.xlu1 %1043, %v741_v12  }
  0x2e   :  { %1009 = vmatpush3.bf16.xpose.msra.mxu0 %v165_v59  ;;  %v357_v59 = vunpack.c.l.s4 %v1079_v58 }
  0x2f   :  { %1036 = vmatprep.subr.msk.bf16.mxu0 %vm133_vm0, %v70_v60  ;;  %770 = vperm.xlu0 %1042, %v738_v14   ;;  %v359_v60 = vlaneseq }
  0x30   :  { %782 = vperm.xlu1 %1043, %v739_v15   ;;  %v358_v1 = vunpack.c.0.s8 %v357_v59 }
  0x31   :  { %v1402_v2 = vshrl.u32 %v359_v60, 7  ;;  %vm948_vm2 = vcmp.lt.s32.totalorder %v359_v60, 256 }
  0x33   :  { %746 = vperm.xlu0 %1042, %v736_v17  }
  0x34   :  { %758 = vperm.xlu1 %1043, %v737_v18  }
  0x36   :  { %1011 = vmatpush3.bf16.xpose.msra.mxu0 %v162_v7  ;;  %v1405_v7 = vsub.s32 %v358_v1, %v1402_v2 }
  0x37   :  { %1037 = vmatprep.subr.msk.bf16.mxu0 %vm133_vm0, %v69_v8 }
  0x3e   :  { %1013 = vmatpush3.bf16.xpose.msra.mxu0 %v159_v16 }
  0x45   :  { %1015 = vmatmul.mubr.msk.bf16.vlgmr.msra.gmra.mxu0 %vm133_vm0, %v1168_v20  ;;  %v1048_v20 = vld [vmem:[%s1507_s1 + $0x20] sm:$0xff]  }
  0x46   :  { %1016 = vmatprep.mubr.msk.bf16.mxu0 %vm133_vm0, %v1045_v19 }
  0x4d   :  { %1017 = vmatmul.mubr.msk.bf16.gmra.mxu0 %vm133_vm0, %v1045_v19 }
  0x4e   :  { %1018 = vmatprep.mubr.msk.bf16.mxu0 %vm133_vm0, %v1046_v21 }
  0x55   :  { %1019 = vmatmul.mubr.msk.bf16.gmra.mxu0 %vm133_vm0, %v1046_v21 }
  0x56   :  { %1020 = vmatprep.mubr.msk.bf16.mxu0 %vm133_vm0, %v1047_v22 }
  0x5d   :  { %1021 = vmatmul.mubr.msk.bf16.gmra.mxu0 %vm133_vm0, %v1047_v22 }
  0x5e   :  { %1022 = vmatprep.mubr.msk.bf16.mxu0 %vm133_vm0, %v1048_v20 }
  0x65   :  { %1023 = vmatmul.mubr.msk.bf16.gmra.mxu0 %vm133_vm0, %v1048_v20 }
  0x66   :  { %1024 = vmatprep.mubr.msk.bf16.mxu0 %vm133_vm0, %v1049_v23 }
  0x6d   :  { %1025 = vmatmul.mubr.msk.bf16.gmra.mxu0 %vm133_vm0, %v1049_v23 }
  0x6e   :  { %1026 = vmatprep.mubr.msk.bf16.mxu0 %vm133_vm0, %v1050_v24 }
  0x75   :  { %1027 = vmatmul.mubr.msk.bf16.gmra.mxu0 %vm133_vm0, %v1050_v24 }
  0x76   :  { %1028 = vmatprep.mubr.msk.bf16.mxu0 %vm133_vm0, %v1051_v25 }
  0x7d   :  { %1029 = vmatmul.mubr.msk.bf16.gmra.mxu0 %vm133_vm0, %v1051_v25 }
  0x82   :  { %v522_v49 = vpop.permute.xlu0 %521 }
  0x83   :  { %v498_v50 = vpop.permute.xlu1 %497  ;;  %v530_v10 = vrot.slane %v522_v49, %v1405_v7 }
  0x84   :  { %v506_v13 = vrot.slane %v498_v50, %v1405_v7 }
  0x86   :  { %v534_v54 = vpop.permute.xlu0 %533 }
  0x87   :  { %v510_v55 = vpop.permute.xlu1 %509  ;;  %v542_v11 = vrot.slane %v534_v54, %v1405_v7 }
  0x88   :  { %v518_v14 = vrot.slane %v510_v55, %v1405_v7 }
  0x89   :  { %v988_v19 = vcombine.low %v530_v10, %v542_v11 }
  0x8a   :  { %v474_v62 = vpop.permute.xlu0 %473  ;;  %v987_v20 = vcombine.low %v506_v13, %v518_v14 }
  0x8b   :  { %v486_v63 = vpop.permute.xlu1 %485  ;;  %v482_v24 = vrot.slane %v474_v62, %v1405_v7 }
  0x8c   :  { %v494_v23 = vrot.slane %v486_v63, %v1405_v7 }
  0x8e   :  { %v450_v5 = vpop.permute.xlu0 %449  ;;  %v986_v1 = vcombine.low %v482_v24, %v494_v23 }
  0x8f   :  { %v462_v8 = vpop.permute.xlu1 %461 }
  0x90   :  { %v470_v55 = vrot.slane %v462_v8, %v1405_v7 }
  0x92   :  { %v426_v16 = vpop.permute.xlu0 %425 }
  0x93   :  { %v438_v21 = vpop.permute.xlu1 %437 }
  0x96   :  { %v402_v10 = vpop.permute.xlu0 %401 }
 0x105   :  { %v1353_v26 = vpop.f32.mrf.mxu0 }
 0x107   :  { %v1355_v27 = vpop.f32.mrf.mxu0 }
 0x109   :  { %v1357_v28 = vpop.f32.mrf.mxu0 }
 0x10a   :  { %v319_v29 = vpack.c.bf16 %v1357_v28, %v1353_v26  ;;  %v1053_v26 = vld [vmem:[%s1509_s3 + $0x8] sm:$0xff]   ;;  %v1054_v28 = vld [vmem:[%s1509_s3 + $0x10] sm:$0xff]  }
 0x10b   :  { %v1361_v30 = vpop.f32.mrf.mxu0 }
 0x10c   :  { %v320_v31 = vpack.c.bf16 %v1361_v30, %v1355_v27  ;;  %v1052_v27 = vld [vmem:[%s1509_s3] sm:$0xff]  }
 0x10d   :  { %v1365_v32 = vpop.f32.mrf.mxu0 }
 0x10f   :  { %v1367_v33 = vpop.f32.mrf.mxu0 }
 0x111   :  { %v1369_v34 = vpop.f32.mrf.mxu0 }
 0x112   :  { %v321_v35 = vpack.c.bf16 %v1369_v34, %v1365_v32 }
 0x113   :  { %v1373_v36 = vpop.f32.mrf.mxu0 }
 0x114   :  { %v322_v37 = vpack.c.bf16 %v1373_v36, %v1367_v33 }
 0x115   :  { %v1377_v38 = vpop.f32.mrf.mxu0 }
 0x117   :  { %v1379_v39 = vpop.f32.mrf.mxu0 }
 0x119   :  { %v1381_v40 = vpop.f32.mrf.mxu0 }
 0x11b   :  { %v1383_v41 = vpop.f32.mrf.mxu0 }
 0x11d   :  { %v1385_v42 = vpop.f32.mrf.mxu0 }
 0x11f   :  { %v1387_v43 = vpop.f32.mrf.mxu0 }
 0x121   :  { %v1389_v44 = vpop.f32.mrf.mxu0 }
 0x123   :  { %v1391_v45 = vpop.f32.mrf.mxu0 }
 0x125   :  { %v1393_v46 = vpop.f32.mrf.mxu0 }
 0x127   :  { %v1395_v47 = vpop.f32.mrf.mxu0 }
 0x129   :  { %v1397_v48 = vpop.f32.mrf.mxu0 }
 0x12b   :  { %v1399_v51 = vpop.f32.mrf.mxu0 }
 0x12d   :  { %v290_v52 = vpop.f32.mrf.mxu0 }
 0x12f   :  { %v292_v53 = vpop.f32.mrf.mxu0 }
 0x131   :  { %v294_v56 = vpop.f32.mrf.mxu0 }
 0x132   :  { %v329_v11 = vpack.c.bf16 %v294_v56, %v290_v52  ;;  %v327_v52 = vpack.c.bf16 %v1397_v48, %v1393_v46  ;;  %v325_v46 = vpack.c.bf16 %v1389_v44, %v1385_v42  ;;  %v323_v42 = vpack.c.bf16 %v1381_v40, %v1377_v38 }
 0x133   :  { %v296_v57 = vpop.f32.mrf.mxu0 }
 0x134   :  { %v330_v58 = vpack.c.bf16 %v296_v57, %v292_v53  ;;  %v601_v56 = vadd.bf16 %v986_v1, %v329_v11 }
 0x135   :  { %v300_v61 = vpop.f32.mrf.mxu0 }
 0x136   :  { %v602_v62 = vadd.bf16 %v986_v1, %v330_v58 }
 0x137   :  { %v302_v0 = vpop.f32.mrf.mxu0 }
 0x139   :  { %v304_v3 = vpop.f32.mrf.mxu0 }
 0x13a   :  { %v331_v49 = vpack.c.bf16 %v304_v3, %v300_v61  ;;  %v328_v61 = vpack.c.bf16 %v1399_v51, %v1395_v47  ;;  %v446_v3 = vrot.slane %v438_v21, %v1405_v7  ;;  %v326_v47 = vpack.c.bf16 %v1391_v45, %v1387_v43 }
 0x13b   :  { %v306_v4 = vpop.f32.mrf.mxu0  ;;  %v324_v43 = vpack.c.bf16 %v1383_v41, %v1379_v39 }
 0x13c   :  { %v332_v17 = vpack.c.bf16 %v306_v4, %v302_v0  ;;  %v458_v0 = vrot.slane %v450_v5, %v1405_v7  ;;  %v603_v13 = vadd.bf16 %v987_v20, %v331_v49  ;;  %v434_v5 = vrot.slane %v426_v16, %v1405_v7 }
 0x13d   :  { %v310_v9 = vpop.f32.mrf.mxu0  ;;  %v410_v16 = vrot.slane %v402_v10, %v1405_v7 }
 0x13e   :  { %v604_v59 = vadd.bf16 %v987_v20, %v332_v17  ;;  %v985_v57 = vcombine.low %v458_v0, %v470_v55  ;;  %v619_v8 = vmax.bf16 %v1078_v6, %v603_v13  ;;  %v984_v17 = vcombine.low %v434_v5, %v446_v3 }
 0x13f   :  { %v312_v12 = vpop.f32.mrf.mxu0 }
 0x140   :  { %v620_v53 = vmax.bf16 %v1078_v6, %v604_v59  ;;  %v600_v51 = vadd.bf16 %v985_v57, %v328_v61  ;;  %v599_v48 = vadd.bf16 %v985_v57, %v327_v52  ;;  %v598_v45 = vadd.bf16 %v984_v17, %v326_v47 }
 0x141   :  { %v314_v15 = vpop.f32.mrf.mxu0  ;;  %v597_v44 = vadd.bf16 %v984_v17, %v325_v46 }
 0x142   :  { %v333_v18 = vpack.c.bf16 %v314_v15, %v310_v9  ;;  %v414_v9 = vpop.permute.xlu1 %413  ;;  %v378_v15 = vpop.permute.xlu0 %377  ;;  %v616_v21 = vmax.bf16 %v1078_v6, %v600_v51  ;;  %v615_v49 = vmax.bf16 %v1078_v6, %v599_v48  ;;  %v614_v39 = vmax.bf16 %v1078_v6, %v598_v45 }
 0x143   :  { %v316_v22 = vpop.f32.mrf.mxu0  ;;  %v386_v23 = vrot.slane %v378_v15, %v1405_v7  ;;  %v613_v1 = vmax.bf16 %v1078_v6, %v597_v44 }
 0x144   :  { %v334_v25 = vpack.c.bf16 %v316_v22, %v312_v12  ;;  %v605_v54 = vadd.bf16 %v988_v19, %v333_v18  ;;  %v618_v12 = vmax.bf16 %v1078_v6, %v602_v62  ;;  %v422_v18 = vrot.slane %v414_v9, %v1405_v7 }
 0x146   :  { %v606_v50 = vadd.bf16 %v988_v19, %v334_v25  ;;  %v621_v63 = vmax.bf16 %v1078_v6, %v605_v54  ;;  %v390_v14 = vpop.permute.xlu1 %389  ;;  %v617_v19 = vmax.bf16 %v1078_v6, %v601_v56  ;;  %v983_v22 = vcombine.low %v410_v16, %v422_v18  ;;  %v354_v25 = vpop.permute.xlu0 %353 }
 0x147   :  { %v398_v20 = vrot.slane %v390_v14, %v1405_v7  ;;  %v362_v59 = vrot.slane %v354_v25, %v1405_v7 }
 0x148   :  { %v622_v4 = vmax.bf16 %v1078_v6, %v606_v50  ;;  %v596_v54 = vadd.bf16 %v983_v22, %v324_v43  ;;  %v595_v50 = vadd.bf16 %v983_v22, %v323_v42 }
 0x149   :  { %v982_v41 = vcombine.low %v386_v23, %v398_v20 }
 0x14a   :  { %655 = vmatprep.subr.bf16.mxu1 %v622_v4  ;;  %v366_v24 = vpop.permute.xlu1 %365  ;;  %v612_v40 = vmax.bf16 %v1078_v6, %v596_v54  ;;  %v611_v4 = vmax.bf16 %v1078_v6, %v595_v50  ;;  %v819_v62 = vpop.permute.xlu0 %818 }
 0x14b   :  { %656 = vmatpush1.bf16.msra.mxu1 %v621_v63  ;;  %v374_v58 = vrot.slane %v366_v24, %v1405_v7  ;;  %v594_v38 = vadd.bf16 %v982_v41, %v322_v37  ;;  %v593_v0 = vadd.bf16 %v982_v41, %v321_v35  ;;  %v827_v14 = vrot.slane %v819_v62, %v1405_v7 }
 0x14c   :  { %657 = vmatprep.subr.bf16.mxu1 %v620_v53 }
 0x14d   :  { %v981_v55 = vcombine.low %v362_v59, %v374_v58  ;;  %v610_v10 = vmax.bf16 %v1078_v6, %v594_v38  ;;  %v609_v36 = vmax.bf16 %v1078_v6, %v593_v0 }
 0x14e   :  { %v831_v61 = vpop.permute.xlu1 %830  ;;  %v795_v52 = vpop.permute.xlu0 %794 }
 0x14f   :  { %658 = vmatpush1.bf16.msra.mxu1 %v619_v8  ;;  %v592_v9 = vadd.bf16 %v981_v55, %v320_v31  ;;  %v591_v33 = vadd.bf16 %v981_v55, %v319_v29  ;;  %v1055_v29 = vld [vmem:[%s1509_s3 + $0x18] sm:$0xff]   ;;  %v803_v16 = vrot.slane %v795_v52, %v1405_v7 }
 0x150   :  { %659 = vmatprep.subr.bf16.mxu1 %v618_v12  ;;  %v839_v12 = vrot.slane %v831_v61, %v1405_v7 }
 0x151   :  { %v608_v37 = vmax.bf16 %v1078_v6, %v592_v9  ;;  %v607_v32 = vmax.bf16 %v1078_v6, %v591_v33 }
 0x152   :  { %v807_v5 = vpop.permute.xlu1 %806  ;;  %v771_v15 = vpop.permute.xlu0 %770  ;;  %v996_v43 = vcombine.low %v827_v14, %v839_v12 }
 0x153   :  { %660 = vmatpush1.bf16.msra.mxu1 %v617_v19  ;;  %v815_v18 = vrot.slane %v807_v5, %v1405_v7  ;;  %v779_v20 = vrot.slane %v771_v15, %v1405_v7 }
 0x154   :  { %661 = vmatprep.subr.bf16.mxu1 %v616_v21 }
 0x155   :  { %v995_v21 = vcombine.low %v803_v16, %v815_v18 }
 0x156   :  { %v783_v51 = vpop.permute.xlu1 %782  ;;  %v747_v25 = vpop.permute.xlu0 %746 }
 0x157   :  { %662 = vmatpush1.bf16.msra.mxu1 %v615_v49  ;;  %v791_v22 = vrot.slane %v783_v51, %v1405_v7  ;;  %v755_v59 = vrot.slane %v747_v25, %v1405_v7 }
 0x158   :  { %663 = vmatprep.subr.bf16.mxu1 %v614_v39 }
 0x159   :  { %v994_v41 = vcombine.low %v779_v20, %v791_v22 }
 0x15a   :  { %v759_v24 = vpop.permute.xlu1 %758 }
 0x15b   :  { %664 = vmatpush1.bf16.msra.mxu1 %v613_v1  ;;  %v767_v58 = vrot.slane %v759_v24, %v1405_v7 }
 0x15c   :  { %665 = vmatprep.subr.bf16.mxu1 %v612_v40 }
 0x15d   :  { %v993_v9 = vcombine.low %v755_v59, %v767_v58 }
 0x15f   :  { %666 = vmatpush1.bf16.msra.mxu1 %v611_v4 }
 0x160   :  { %667 = vmatprep.subr.bf16.mxu1 %v610_v10 }
 0x163   :  { %668 = vmatpush1.bf16.msra.mxu1 %v609_v36 }
 0x164   :  { %669 = vmatprep.subr.bf16.mxu1 %v608_v37 }
 0x167   :  { %670 = vmatpush1.bf16.msra.mxu1 %v607_v32 }
 0x16a   :  { %688 = vmatmul.mubr.bf16.vlgmr.msra.gmra.mxu1 %v1052_v27 }
 0x16b   :  { %697 = vmatprep.mubr.bf16.mxu1 %v1078_v6 }
 0x172   :  { %698 = vmatmul.mubr.bf16.gmra.mxu1 %v1053_v26 }
 0x173   :  { %707 = vmatprep.mubr.bf16.mxu1 %v1078_v6 }
 0x17a   :  { %708 = vmatmul.mubr.bf16.gmra.mxu1 %v1054_v28 }
 0x17b   :  { %717 = vmatprep.mubr.bf16.mxu1 %v1078_v6 }
 0x182   :  { %718 = vmatmul.mubr.bf16.gmra.mxu1 %v1055_v29  ;;  %v880_v29 = vld [vmem:[%s1511_s5] sm:$0x1] }
 0x183   :  { %919 = vmatprep.mubr.bf16.mxu1 %v1078_v6 }
 0x22a   :  { %v689_v30 = vpop.f32.mrf.mxu1 }
 0x22c   :  { %v691_v31 = vpop.f32.mrf.mxu1 }
 0x22e   :  { %v693_v34 = vpop.f32.mrf.mxu1 }
 0x22f   :  { %v728_v10 = vpack.c.bf16 %v693_v34, %v689_v30  ;;  %v1080_v30 = vmov 1966171168  }
 0x230   :  { %v695_v35 = vpop.f32.mrf.mxu1 }
 0x231   :  { %v729_v55 = vpack.c.bf16 %v695_v35, %v691_v31  ;;  %v864_v32 = vadd.bf16 %v993_v9, %v728_v10  ;;  %v932_v31 = vunpack.c.l.s4 %v1080_v30  ;;  %v882_v35 = vstv %s1512_s6 }
 0x232   :  { %v699_v11 = vpop.f32.mrf.mxu1 }
 0x233   :  { %v865_v37 = vadd.bf16 %v993_v9, %v729_v55  ;;  %v872_v28 = vmax.bf16 %v1078_v6, %v864_v32  ;;  %v933_v34 = vunpack.c.0.s8 %v932_v31 }
 0x234   :  { %v701_v13 = vpop.f32.mrf.mxu1 }
 0x235   :  { %v873_v26 = vmax.bf16 %v1078_v6, %v865_v37 }
 0x236   :  { %v703_v63 = vpop.f32.mrf.mxu1 }
 0x237   :  { %v730_v1 = vpack.c.bf16 %v703_v63, %v699_v11 }
 0x238   :  { %v705_v53 = vpop.f32.mrf.mxu1 }
 0x239   :  { %v731_v49 = vpack.c.bf16 %v705_v53, %v701_v13  ;;  %v866_v33 = vadd.bf16 %v994_v41, %v730_v1 }
 0x23a   :  { %v709_v57 = vpop.f32.mrf.mxu1 }
 0x23b   :  { %v867_v0 = vadd.bf16 %v994_v41, %v731_v49  ;;  %v874_v27 = vmax.bf16 %v1078_v6, %v866_v33 }
 0x23c   :  { %v711_v3 = vpop.f32.mrf.mxu1 }
 0x23d   :  { %v875_v7 = vmax.bf16 %v1078_v6, %v867_v0 }
 0x23e   :  { %v713_v56 = vpop.f32.mrf.mxu1 }
 0x23f   :  { %v732_v42 = vpack.c.bf16 %v713_v56, %v709_v57 }
 0x240   :  { %v715_v8 = vpop.f32.mrf.mxu1 }
 0x241   :  { %v733_v48 = vpack.c.bf16 %v715_v8, %v711_v3  ;;  %v868_v38 = vadd.bf16 %v995_v21, %v732_v42 }
 0x242   :  { %v719_v47 = vpop.f32.mrf.mxu1 }
 0x243   :  { %v869_v54 = vadd.bf16 %v995_v21, %v733_v48  ;;  %v876_v36 = vmax.bf16 %v1078_v6, %v868_v38 }
 0x244   :  { %v721_v17 = vpop.f32.mrf.mxu1 }
 0x245   :  { %v877_v4 = vmax.bf16 %v1078_v6, %v869_v54 }
 0x246   :  { %v723_v46 = vpop.f32.mrf.mxu1 }
 0x247   :  { %v734_v19 = vpack.c.bf16 %v723_v46, %v719_v47 }
 0x248   :  { %v725_v45 = vpop.f32.mrf.mxu1 }
 0x249   :  { %v735_v23 = vpack.c.bf16 %v725_v45, %v721_v17  ;;  %v870_v44 = vadd.bf16 %v996_v43, %v734_v19 }
 0x24b   :  { %v871_v39 = vadd.bf16 %v996_v43, %v735_v23  ;;  %v878_v40 = vmax.bf16 %v1078_v6, %v870_v44 }
 0x24d   :  { %v879_v50 = vmax.bf16 %v1078_v6, %v871_v39  ;;  %v936_v6 = vsub.s32 %v933_v34, %v1402_v2 }
 0x24f   :  { %895 = vmatprep.subr.bf16.mxu1 %v879_v50 }
 0x250   :  { %896 = vmatpush1.bf16.msra.mxu1 %v878_v40 }
 0x251   :  { %897 = vmatprep.subr.bf16.mxu1 %v877_v4 }
 0x254   :  { %898 = vmatpush1.bf16.msra.mxu1 %v876_v36 }
 0x255   :  { %899 = vmatprep.subr.bf16.mxu1 %v875_v7 }
 0x258   :  { %900 = vmatpush1.bf16.msra.mxu1 %v874_v27 }
 0x259   :  { %901 = vmatprep.subr.bf16.mxu1 %v873_v26 }
 0x25c   :  { %902 = vmatpush1.bf16.msra.mxu1 %v872_v28 }
 0x25f   :  { %997 = vmatmul.mubr.msk.bf16.vlgmr.msra.gmra.mxu1 %vm883_vm1, %v880_v29 }
 0x31f   :  { %v921_v11 = vpop.f32.mrf.mxu1 }
 0x320   :  { %v922_v63 = vadd.f32 %v921_v11, %v882_v35 }
 0x321   :  { %v923_v13 = vpop.f32.mrf.mxu1 }
 0x322   :  { %v924_v61 = vadd.f32 %v923_v13, %v882_v35 }
 0x323   :  { %v925_v62 = vpop.f32.mrf.mxu1 }
 0x324   :  { %v930_v53 = vcombine.low %v922_v63, %v924_v61 }
 0x325   :  { %v926_v57 = vpop.f32.mrf.mxu1 }
 0x326   :  { %v937_v3 = vrot.slane %v930_v53, %v936_v6 }
 0x328   :  { %v944_v5 = vrot.slane %v937_v3, %v936_v6 }
 0x32a   :  { %950 = vst.msk [vmem:[#allocation3] sm:$0x3] %vm948_vm2, %v944_v5 }
 0x32b   :  { %955 = vsyncadd [#allocation4], 16  ;;  %s1081_s5 = smov [#allocation3]  }
 0x32c   :  { %s957_s19 = sshll.u32 %s1081_s5, 4  ;;  %s958_s19 = int_to_ptr.vmem [resolvable:$true] %s957_s19 }
 0x32d   :  { %s1056_s20 = scalar_lea.vmem %s958_s19, 16  ;;  %s1060_s6 = scalar_lea.vmem %s958_s19, 32 }
 0x32e   :  { %p1057_p0 = scmp.ne.s32.totalorder %s958_s19, %s1056_s20  ;;  %p1061_p1 = scmp.lt.s32.totalorder %s958_s19, %s958_s19 }
 0x32f   :  { %p1062_p2 = scmp.lt.s32.totalorder %s1060_s6, %s1056_s20 }
 0x331   :  { %p1063_p3 = por %p1062_p2, %p1061_p1 }
 0x333   :  { %p1064_p4 = pnand %p1063_p3, %p1057_p0 }
 0x335   :  { %1067 = shalt.err (!%p1064_p4)
}
 0x336   :  { %960 = dma.vmem_to_hbm [thread:$0]  %s958_s19, 16, %s1513_s7, [#allocation4]  }
 0x337   :  { %1076 = dma.done.wait [#allocation4], 32  }
 0x338   :  { %1077 = vsyncadd [#allocation4], 4294967264 }
 0x339   :  { %964 = vsyncpa [#allocation4], 1 }

</bundles_post_ra>
